<compile_context>
chip_gen: v6e
topology: v6e:2x2x1
jax: 0.10.0
libtpu: 0.0.40
codegen_flags: <defaults>
</compile_context>

<pallas_src>
import jax
import jax.numpy as jnp
from jax.experimental import pallas as pl
from jax.experimental.pallas import tpu as pltpu

_LANE = 128


def _copy_kernel(x_ref, o_ref):
    # Pure pass-through: out = in.
    o_ref[...] = x_ref[...]


def identity(x):
    """Pallas implementation of `Identity.forward`: returns x unchanged."""
    n = x.size
    if n == 0:
        return x

    dtype = x.dtype
    itemsize = jnp.dtype(dtype).itemsize
    # Sublane packing multiple: 8 for 32-bit, 16 for bf16/fp16, 32 for int8/fp8.
    sub = max(8, 32 // itemsize)

    if n % _LANE == 0:
        # Lane-dense 2D view of the flat data: no padding, unmasked 128-wide
        # stores (reshape of contiguous data is effectively free).
        rows = n // _LANE
        slab = x.reshape(rows, _LANE)

        # Target ~2 MiB per block, rounded to the sublane packing multiple.
        target_block_bytes = 2 * 1024 * 1024
        target_rows = max(sub, (target_block_bytes // (_LANE * itemsize)) // sub * sub)
        if rows <= target_rows:
            block_rows = rows        # single block; equals full dim -> always legal
        else:
            block_rows = target_rows  # multiple of `sub`; ragged tail handled by
                                      # Pallas' masked partial last block
        grid = (pl.cdiv(rows, block_rows),)

        out_slab = pl.pallas_call(
            _copy_kernel,
            out_shape=jax.ShapeDtypeStruct(slab.shape, slab.dtype),
            grid=grid,
            in_specs=[pl.BlockSpec((block_rows, _LANE), lambda i: (i, 0))],
            out_specs=pl.BlockSpec((block_rows, _LANE), lambda i: (i, 0)),
            input_output_aliases={0: 0},
            compiler_params=pltpu.CompilerParams(
                dimension_semantics=("parallel",)),
        )(slab)
        return out_slab.reshape(x.shape)

    # Ragged total size (not a multiple of 128): copy as one full-array block
    # (block_shape == full array dims is always layout-legal).
    # TODO(synk): for very large ragged sizes, split a 128-aligned main slab
    # plus a small tail instead of a single whole-array VMEM block.
    flat = x.reshape(1, n)
    out = pl.pallas_call(
        _copy_kernel,
        out_shape=jax.ShapeDtypeStruct((1, n), dtype),
        grid=(1,),
        in_specs=[pl.BlockSpec((1, n), lambda i: (0, 0))],
        out_specs=pl.BlockSpec((1, n), lambda i: (0, 0)),
        input_output_aliases={0: 0},
    )(flat)
    return out.reshape(x.shape)


if __name__ == "__main__":
    key = jax.random.PRNGKey(0)
    # Small NCHW input, consistent with an image-classifier forward pass.
    x = jax.random.normal(key, (2, 4, 16, 16), dtype=jnp.float32)

    y = jax.jit(identity)(x)
    y = jax.block_until_ready(y)

    assert y.shape == x.shape
    assert y.dtype == x.dtype
    assert bool(jnp.array_equal(y, x))

    print("KERNEL_OK")
</pallas_src>

<mosaic_0001>
module attributes {stable_mosaic.version = 11 : i64} {
  func.func @_copy_kernel(%arg0: i32, %arg1: memref<16x128xf32, #tpu.memory_space<vmem>>, %arg2: memref<16x128xf32, #tpu.memory_space<vmem>>) attributes {dimension_semantics = [#tpu.dimension_semantics<parallel>], iteration_bounds = array<i64: 1>, scalar_prefetch = 0 : i64, scratch_operands = 0 : i64, tpu.core_type = #tpu.core_type<tc>, window_params = [{transform_indices = @transform_0, window_bounds = array<i64: 16, 128>}, {transform_indices = @transform_1, window_bounds = array<i64: 16, 128>}]} {
    %c0 = arith.constant 0 : index
    %c0_0 = arith.constant 0 : index
    %0 = vector.load %arg1[%c0, %c0_0] : memref<16x128xf32, #tpu.memory_space<vmem>>, vector<16x128xf32>
    %c0_1 = arith.constant 0 : index
    %c0_2 = arith.constant 0 : index
    %1 = vector.load %arg2[%c0_1, %c0_2] : memref<16x128xf32, #tpu.memory_space<vmem>>, vector<16x128xf32>
    tpu.vector_store %arg2[%c0_1, %c0_2], %0 {strides = array<i32>} : memref<16x128xf32, #tpu.memory_space<vmem>>, vector<16x128xf32>,
    return
  }
  func.func @transform_0(%arg0: i32) -> (i32, i32) {
    %c0_i32 = arith.constant 0 : i32
    %c0_i32_0 = arith.constant 0 : i32
    return %arg0, %c0_i32 : i32, i32
  }
  func.func @transform_1(%arg0: i32) -> (i32, i32) {
    %c0_i32 = arith.constant 0 : i32
    %c0_i32_0 = arith.constant 0 : i32
    return %arg0, %c0_i32 : i32, i32
  }
}

</mosaic_0001>

<bundles_post_ra>
// kernel: identity.1
= control target key start
LH: loop header
LB: loop body
LE: loop exit
PB: predicated region body
PF: predicated region fallthrough
CT: control target
= control target key end

     0   :  { %s38_s0 = inlined_call_operand.vmem [shape: f32[16,128], index: 0, kind: input, shape index: {}, may-alias: {0,1}]   ;;  %s39_s1 = inlined_call_operand.vmem [shape: f32[16,128], index: 1, kind: output, shape index: {}, may-alias: {0,1}]  }
   0x1   :  { %v8_v0 = vld [vmem:[%s38_s0] sm:$0xff]  ;;  %v9_v1 = vld [vmem:[%s38_s0 + $0x8] sm:$0xff] }
   0x2   :  { %10 = vst [vmem:[%s39_s1] sm:$0xff] %v8_v0  ;;  %11 = vst [vmem:[%s39_s1 + $0x8] sm:$0xff] %v9_v1 }

</bundles_post_ra>
